<compile_context>
chip_gen: v7x
topology: tpu7x:2x2x1
jax: 0.10.0
libtpu: 0.0.40
codegen_flags: <defaults>
</compile_context>

<pallas_src>
import functools

import numpy as np
import jax
import jax.numpy as jnp
from jax import lax
from jax.experimental import pallas as pl
from jax.experimental.pallas import tpu as pltpu

EPS = 1e-5  # nn.InstanceNorm2d default eps


def _tap_masks_host(H, W):
    """(9, 1, H*W) f32 validity masks for the 3x3 taps, built once on the host."""
    HW = H * W
    pos = np.arange(HW)
    y, x = pos // W, pos % W
    ms = []
    for ky in range(3):
        for kx in range(3):
            dy, dx = ky - 1, kx - 1
            ms.append((y >= -dy) & (y < H - dy) & (x >= -dx) & (x < W - dx))
    return jnp.asarray(np.stack(ms).reshape(9, 1, HW).astype(np.float32))


def _pack_conv(w, b, Cp):
    """OIHW (C,C,3,3)+(C,) -> ((Cp, 9*Cp), (Cp,1)); column order (ky*3+kx)*Cp + ci."""
    C = w.shape[0]
    wt = jnp.transpose(w, (0, 2, 3, 1))                                 # (O, ky, kx, ci)
    wt = jnp.pad(wt, ((0, Cp - C), (0, 0), (0, 0), (0, Cp - C)))
    wm = wt.reshape(Cp, 9 * Cp).astype(jnp.float32)
    bc = jnp.pad(b, (0, Cp - C)).reshape(Cp, 1).astype(jnp.float32)
    return wm, bc


def _images_per_step(N, bytes_per_image):
    """Images per grid step: target ~2 MiB activation tiles (amortize the ~0.35 us
    per-step overhead / grow the DMA + MXU-N dim), cap the unroll, and keep >= 2
    grid steps when N >= 2 so "parallel" actually feeds both v7x TensorCores."""
    target = 2 << 20
    B = int(max(1, min(16, target // max(1, bytes_per_image))))
    B = min(B, N)
    while B > 1 and -(-N // B) < 2:
        B -= 1
    return max(1, B)


def residual_block_kernel(x_ref, w1_ref, b1_ref, w2_ref, b2_ref, m_ref, o_ref, *, H, W):
    # x_ref/o_ref: (B, Cp, H*W)  channels on sublanes (Cp % 8 == 0), spatial on lanes
    # w*_ref:      (Cp, 9*Cp)    im2col weights (bias applied post-matmul)
    # b*_ref:      (Cp, 1)       biases
    # m_ref:       (9, 1, H*W)   f32 0/1 validity masks per tap (host precomputed)
    B, Cp, HW = x_ref.shape
    w1, w2 = w1_ref[...], w2_ref[...]
    b1, b2 = b1_ref[...], b2_ref[...]
    masks = [m_ref[i] for i in range(9)]            # (1, HW) each; hoisted, reused

    def conv3x3(act, wmat, bias):
        rows = []
        for ky in range(3):
            for kx in range(3):
                d = (ky - 1) * W + (kx - 1)
                if d == 0:
                    rows.append(act)                 # center tap: no shift, no mask
                else:
                    rows.append(pltpu.roll(act, (-d) % HW, axis=1) * masks[ky * 3 + kx])
        patches = jnp.concatenate(rows, axis=0)      # (9*Cp, HW), (8,128)-tile aligned
        # f32 matmul keeps us well inside the 2e-3 tolerance; the MXU is far from the
        # bottleneck at these shapes (cast to bf16 only if C grows, esp. on v5e).
        return jnp.dot(wmat, patches, preferred_element_type=jnp.float32) + bias

    def inorm(y):
        # per-channel stats over the spatial (lane) axis; biased variance, eps inside
        # the rsqrt — matches nn.InstanceNorm2d(affine=False).
        mean = jnp.mean(y, axis=1, keepdims=True)
        ctr = y - mean
        var = jnp.mean(ctr * ctr, axis=1, keepdims=True)
        return ctr * lax.rsqrt(var + EPS)

    # B is a small trace-time constant -> unrolled (== lax.fori_loop(unroll=True));
    # each image is a lane-dense 2-D pipeline of two matmuls.
    for b in range(B):
        x = x_ref[b]                                             # (Cp, HW) f32
        y = jnp.maximum(inorm(conv3x3(x, w1, b1)), 0.0)          # conv1 -> IN1 -> ReLU
        z = inorm(conv3x3(y, w2, b2))                            # conv2 -> IN2
        o_ref[b] = jnp.maximum(z + x, 0.0)                       # + residual -> ReLU


def residual_block(x_nchw, w1, b1, w2, b2):
    """x: (N, C, H, W) NCHW; w*: (C, C, 3, 3) OIHW; b*: (C,)."""
    N, C, H, W = x_nchw.shape
    HW = H * W
    assert HW % 128 == 0, "flattened spatial axis (H*W) must be a multiple of 128"
    Cp = ((C + 7) // 8) * 8                        # pad channels to the f32 sublane multiple
    B = _images_per_step(N, Cp * HW * 4)
    Npad = -(-N // B) * B

    x_flat = x_nchw.reshape(N, C, HW).astype(jnp.float32)        # pure reshape, no transpose
    x_flat = jnp.pad(x_flat, ((0, Npad - N), (0, Cp - C), (0, 0)))

    w1m, b1c = _pack_conv(w1, b1, Cp)
    w2m, b2c = _pack_conv(w2, b2, Cp)
    masks = _tap_masks_host(H, W)

    # TODO(synk): for large H/W/C add an H-strip grid axis with a 2-row halo and an
    # explicit vmem_limit_bytes so per-step blocks fit v7x's 64 MiB VMEM; the
    # constant-index weight/bias/mask inputs could then also use
    # pipeline_mode=pl.Buffered(1) to drop their unused second pipeline buffer.
    out_flat = pl.pallas_call(
        functools.partial(residual_block_kernel, H=H, W=W),
        out_shape=jax.ShapeDtypeStruct((Npad, Cp, HW), jnp.float32),
        grid_spec=pltpu.PrefetchScalarGridSpec(
            num_scalar_prefetch=0,
            grid=(Npad // B,),           # >= 2 steps -> megacore sharding on v7x
            in_specs=[
                pl.BlockSpec((B, Cp, HW), lambda n: (n, 0, 0)),      # activations
                pl.BlockSpec((Cp, 9 * Cp), lambda n: (0, 0)),        # w1 (im2col)
                pl.BlockSpec((Cp, 1), lambda n: (0, 0)),             # b1
                pl.BlockSpec((Cp, 9 * Cp), lambda n: (0, 0)),        # w2 (im2col)
                pl.BlockSpec((Cp, 1), lambda n: (0, 0)),             # b2
                pl.BlockSpec((9, 1, HW), lambda n: (0, 0, 0)),       # tap masks
            ],
            out_specs=pl.BlockSpec((B, Cp, HW), lambda n: (n, 0, 0)),
        ),
        compiler_params=pltpu.CompilerParams(
            dimension_semantics=("parallel",)),
    )(x_flat, w1m, b1c, w2m, b2c, masks)
    return out_flat[:N, :C, :].reshape(N, C, H, W)


def reference(x_nchw, w1, b1, w2, b2):
    """Pure-JAX reference matching torch semantics (NCHW, OIHW)."""
    def conv(x, w, b):
        y = lax.conv_general_dilated(
            x, w, window_strides=(1, 1), padding=((1, 1), (1, 1)),
            dimension_numbers=("NCHW", "OIHW", "NCHW"))
        return y + b.reshape(1, -1, 1, 1)

    def inorm(y):
        mean = jnp.mean(y, axis=(2, 3), keepdims=True)
        var = jnp.mean((y - mean) ** 2, axis=(2, 3), keepdims=True)
        return (y - mean) / jnp.sqrt(var + EPS)

    out = jax.nn.relu(inorm(conv(x_nchw, w1, b1)))
    out = inorm(conv(out, w2, b2))
    return jax.nn.relu(out + x_nchw)


if __name__ == "__main__":
    N, C, H, W = 2, 4, 16, 16      # in_channels == out_channels (residual add)
    key = jax.random.PRNGKey(0)
    k_x, k_w1, k_b1, k_w2, k_b2 = jax.random.split(key, 5)

    x = jax.random.normal(k_x, (N, C, H, W), dtype=jnp.float32)
    # Conv2d shapes: (Cout, Cin, 3, 3) weights + (Cout,) biases
    w1 = jax.random.normal(k_w1, (C, C, 3, 3), dtype=jnp.float32) * 0.1
    b1 = jax.random.normal(k_b1, (C,), dtype=jnp.float32) * 0.1
    w2 = jax.random.normal(k_w2, (C, C, 3, 3), dtype=jnp.float32) * 0.1
    b2 = jax.random.normal(k_b2, (C,), dtype=jnp.float32) * 0.1

    out = residual_block(x, w1, b1, w2, b2)
    out = jax.block_until_ready(out)

    ref = jax.block_until_ready(reference(x, w1, b1, w2, b2))
    assert out.shape == (N, C, H, W)
    assert np.allclose(np.asarray(out), np.asarray(ref), rtol=2e-3, atol=2e-3)

    print("KERNEL_OK")
</pallas_src>

<mosaic_0001>
module attributes {stable_mosaic.version = 11 : i64} {
  func.func @residual_block_kernel(%arg0: i32, %arg1: memref<1x8x256xf32, #tpu.memory_space<vmem>>, %arg2: memref<8x72xf32, #tpu.memory_space<vmem>>, %arg3: memref<8x1xf32, #tpu.memory_space<vmem>>, %arg4: memref<8x72xf32, #tpu.memory_space<vmem>>, %arg5: memref<8x1xf32, #tpu.memory_space<vmem>>, %arg6: memref<9x1x256xf32, #tpu.memory_space<vmem>>, %arg7: memref<1x8x256xf32, #tpu.memory_space<vmem>>) attributes {dimension_semantics = [#tpu.dimension_semantics<parallel>], iteration_bounds = array<i64: 2>, scalar_prefetch = 0 : i64, scratch_operands = 0 : i64, tpu.core_type = #tpu.core_type<tc>, window_params = [{transform_indices = @transform_0, window_bounds = array<i64: 1, 8, 256>}, {pipeline_mode = #tpu.pipeline_mode<synchronous>, transform_indices = @transform_1, window_bounds = array<i64: 8, 72>}, {pipeline_mode = #tpu.pipeline_mode<synchronous>, transform_indices = @transform_2, window_bounds = array<i64: 8, 1>}, {pipeline_mode = #tpu.pipeline_mode<synchronous>, transform_indices = @transform_3, window_bounds = array<i64: 8, 72>}, {pipeline_mode = #tpu.pipeline_mode<synchronous>, transform_indices = @transform_4, window_bounds = array<i64: 8, 1>}, {pipeline_mode = #tpu.pipeline_mode<synchronous>, transform_indices = @transform_5, window_bounds = array<i64: 9, 1, 256>}, {transform_indices = @transform_6, window_bounds = array<i64: 1, 8, 256>}]} {
    %c0 = arith.constant 0 : index
    %c0_0 = arith.constant 0 : index
    %0 = vector.load %arg2[%c0, %c0_0] : memref<8x72xf32, #tpu.memory_space<vmem>>, vector<8x72xf32>
    %c0_1 = arith.constant 0 : index
    %c0_2 = arith.constant 0 : index
    %1 = vector.load %arg4[%c0_1, %c0_2] : memref<8x72xf32, #tpu.memory_space<vmem>>, vector<8x72xf32>
    %c0_3 = arith.constant 0 : index
    %c0_4 = arith.constant 0 : index
    %2 = vector.load %arg3[%c0_3, %c0_4] : memref<8x1xf32, #tpu.memory_space<vmem>>, vector<8x1xf32>
    %c0_5 = arith.constant 0 : index
    %c0_6 = arith.constant 0 : index
    %3 = vector.load %arg5[%c0_5, %c0_6] : memref<8x1xf32, #tpu.memory_space<vmem>>, vector<8x1xf32>
    %c0_7 = arith.constant 0 : index
    %c0_8 = arith.constant 0 : index
    %c0_9 = arith.constant 0 : index
    %4 = vector.load %arg6[%c0_7, %c0_8, %c0_9] : memref<9x1x256xf32, #tpu.memory_space<vmem>>, vector<1x1x256xf32>
    %5 = vector.shape_cast %4 : vector<1x1x256xf32> to vector<1x256xf32>
    %c1 = arith.constant 1 : index
    %c0_10 = arith.constant 0 : index
    %c0_11 = arith.constant 0 : index
    %6 = vector.load %arg6[%c1, %c0_10, %c0_11] : memref<9x1x256xf32, #tpu.memory_space<vmem>>, vector<1x1x256xf32>
    %7 = vector.shape_cast %6 : vector<1x1x256xf32> to vector<1x256xf32>
    %c2 = arith.constant 2 : index
    %c0_12 = arith.constant 0 : index
    %c0_13 = arith.constant 0 : index
    %8 = vector.load %arg6[%c2, %c0_12, %c0_13] : memref<9x1x256xf32, #tpu.memory_space<vmem>>, vector<1x1x256xf32>
    %9 = vector.shape_cast %8 : vector<1x1x256xf32> to vector<1x256xf32>
    %c3 = arith.constant 3 : index
    %c0_14 = arith.constant 0 : index
    %c0_15 = arith.constant 0 : index
    %10 = vector.load %arg6[%c3, %c0_14, %c0_15] : memref<9x1x256xf32, #tpu.memory_space<vmem>>, vector<1x1x256xf32>
    %11 = vector.shape_cast %10 : vector<1x1x256xf32> to vector<1x256xf32>
    %c5 = arith.constant 5 : index
    %c0_16 = arith.constant 0 : index
    %c0_17 = arith.constant 0 : index
    %12 = vector.load %arg6[%c5, %c0_16, %c0_17] : memref<9x1x256xf32, #tpu.memory_space<vmem>>, vector<1x1x256xf32>
    %13 = vector.shape_cast %12 : vector<1x1x256xf32> to vector<1x256xf32>
    %c6 = arith.constant 6 : index
    %c0_18 = arith.constant 0 : index
    %c0_19 = arith.constant 0 : index
    %14 = vector.load %arg6[%c6, %c0_18, %c0_19] : memref<9x1x256xf32, #tpu.memory_space<vmem>>, vector<1x1x256xf32>
    %15 = vector.shape_cast %14 : vector<1x1x256xf32> to vector<1x256xf32>
    %c7 = arith.constant 7 : index
    %c0_20 = arith.constant 0 : index
    %c0_21 = arith.constant 0 : index
    %16 = vector.load %arg6[%c7, %c0_20, %c0_21] : memref<9x1x256xf32, #tpu.memory_space<vmem>>, vector<1x1x256xf32>
    %17 = vector.shape_cast %16 : vector<1x1x256xf32> to vector<1x256xf32>
    %c8 = arith.constant 8 : index
    %c0_22 = arith.constant 0 : index
    %c0_23 = arith.constant 0 : index
    %18 = vector.load %arg6[%c8, %c0_22, %c0_23] : memref<9x1x256xf32, #tpu.memory_space<vmem>>, vector<1x1x256xf32>
    %19 = vector.shape_cast %18 : vector<1x1x256xf32> to vector<1x256xf32>
    %c0_24 = arith.constant 0 : index
    %c0_25 = arith.constant 0 : index
    %c0_26 = arith.constant 0 : index
    %20 = vector.load %arg1[%c0_24, %c0_25, %c0_26] : memref<1x8x256xf32, #tpu.memory_space<vmem>>, vector<1x8x256xf32>
    %21 = vector.shape_cast %20 : vector<1x8x256xf32> to vector<8x256xf32>
    %c17_i32 = arith.constant 17 : i32
    %22 = tpu.dynamic_rotate %21 by %c17_i32 dim 1 : vector<8x256xf32>, i32 -> vector<8x256xf32>
    %23 = vector.broadcast %5 : vector<1x256xf32> to vector<8x256xf32>
    %24 = arith.mulf %22, %23 : vector<8x256xf32>
    %c16_i32 = arith.constant 16 : i32
    %25 = tpu.dynamic_rotate %21 by %c16_i32 dim 1 : vector<8x256xf32>, i32 -> vector<8x256xf32>
    %26 = vector.broadcast %7 : vector<1x256xf32> to vector<8x256xf32>
    %27 = arith.mulf %25, %26 : vector<8x256xf32>
    %c15_i32 = arith.constant 15 : i32
    %28 = tpu.dynamic_rotate %21 by %c15_i32 dim 1 : vector<8x256xf32>, i32 -> vector<8x256xf32>
    %29 = vector.broadcast %9 : vector<1x256xf32> to vector<8x256xf32>
    %30 = arith.mulf %28, %29 : vector<8x256xf32>
    %c1_i32 = arith.constant 1 : i32
    %31 = tpu.dynamic_rotate %21 by %c1_i32 dim 1 : vector<8x256xf32>, i32 -> vector<8x256xf32>
    %32 = vector.broadcast %11 : vector<1x256xf32> to vector<8x256xf32>
    %33 = arith.mulf %31, %32 : vector<8x256xf32>
    %c255_i32 = arith.constant 255 : i32
    %34 = tpu.dynamic_rotate %21 by %c255_i32 dim 1 : vector<8x256xf32>, i32 -> vector<8x256xf32>
    %35 = vector.broadcast %13 : vector<1x256xf32> to vector<8x256xf32>
    %36 = arith.mulf %34, %35 : vector<8x256xf32>
    %c241_i32 = arith.constant 241 : i32
    %37 = tpu.dynamic_rotate %21 by %c241_i32 dim 1 : vector<8x256xf32>, i32 -> vector<8x256xf32>
    %38 = vector.broadcast %15 : vector<1x256xf32> to vector<8x256xf32>
    %39 = arith.mulf %37, %38 : vector<8x256xf32>
    %c240_i32 = arith.constant 240 : i32
    %40 = tpu.dynamic_rotate %21 by %c240_i32 dim 1 : vector<8x256xf32>, i32 -> vector<8x256xf32>
    %41 = vector.broadcast %17 : vector<1x256xf32> to vector<8x256xf32>
    %42 = arith.mulf %40, %41 : vector<8x256xf32>
    %c239_i32 = arith.constant 239 : i32
    %43 = tpu.dynamic_rotate %21 by %c239_i32 dim 1 : vector<8x256xf32>, i32 -> vector<8x256xf32>
    %44 = vector.broadcast %19 : vector<1x256xf32> to vector<8x256xf32>
    %45 = arith.mulf %43, %44 : vector<8x256xf32>
    %46 = tpu.concatenate %24, %27, %30, %33, %21, %36, %39, %42, %45 in 0 : vector<8x256xf32>, vector<8x256xf32>, vector<8x256xf32>, vector<8x256xf32>, vector<8x256xf32>, vector<8x256xf32>, vector<8x256xf32>, vector<8x256xf32>, vector<8x256xf32> -> vector<72x256xf32>
    %cst = arith.constant dense<0.000000e+00> : vector<8x256xf32>
    %47 = tpu.matmul %0, %46, %cst {dimension_numbers = #tpu.dot_dimension_numbers<[1], [0], [0], [1], [0, 0, 1, 1], [], []>} : vector<8x72xf32>, vector<72x256xf32>, vector<8x256xf32> -> vector<8x256xf32>
    %48 = vector.broadcast %2 : vector<8x1xf32> to vector<8x256xf32>
    %49 = arith.addf %47, %48 : vector<8x256xf32>
    %cst_27 = arith.constant dense<0.000000e+00> : vector<8xf32>
    %50 = vector.multi_reduction <add>, %49, %cst_27 [1] : vector<8x256xf32> to vector<8xf32>
    %51 = vector.shape_cast %50 : vector<8xf32> to vector<8x1xf32>
    %cst_28 = arith.constant 2.560000e+02 : f32
    %52 = vector.broadcast %cst_28 : f32 to vector<8x1xf32>
    %53 = arith.divf %51, %52 : vector<8x1xf32>
    %54 = vector.broadcast %53 : vector<8x1xf32> to vector<8x256xf32>
    %55 = arith.subf %49, %54 : vector<8x256xf32>
    %56 = arith.mulf %55, %55 : vector<8x256xf32>
    %cst_29 = arith.constant dense<0.000000e+00> : vector<8xf32>
    %57 = vector.multi_reduction <add>, %56, %cst_29 [1] : vector<8x256xf32> to vector<8xf32>
    %58 = vector.shape_cast %57 : vector<8xf32> to vector<8x1xf32>
    %cst_30 = arith.constant 2.560000e+02 : f32
    %59 = vector.broadcast %cst_30 : f32 to vector<8x1xf32>
    %60 = arith.divf %58, %59 : vector<8x1xf32>
    %cst_31 = arith.constant 9.99999974E-6 : f32
    %61 = vector.broadcast %cst_31 : f32 to vector<8x1xf32>
    %62 = arith.addf %60, %61 : vector<8x1xf32>
    %63 = math.rsqrt %62 : vector<8x1xf32>
    %64 = vector.broadcast %63 : vector<8x1xf32> to vector<8x256xf32>
    %65 = arith.mulf %55, %64 : vector<8x256xf32>
    %cst_32 = arith.constant 0.000000e+00 : f32
    %66 = vector.broadcast %cst_32 : f32 to vector<8x256xf32>
    %67 = arith.maximumf %65, %66 : vector<8x256xf32>
    %c17_i32_33 = arith.constant 17 : i32
    %68 = tpu.dynamic_rotate %67 by %c17_i32_33 dim 1 : vector<8x256xf32>, i32 -> vector<8x256xf32>
    %69 = vector.broadcast %5 : vector<1x256xf32> to vector<8x256xf32>
    %70 = arith.mulf %68, %69 : vector<8x256xf32>
    %c16_i32_34 = arith.constant 16 : i32
    %71 = tpu.dynamic_rotate %67 by %c16_i32_34 dim 1 : vector<8x256xf32>, i32 -> vector<8x256xf32>
    %72 = vector.broadcast %7 : vector<1x256xf32> to vector<8x256xf32>
    %73 = arith.mulf %71, %72 : vector<8x256xf32>
    %c15_i32_35 = arith.constant 15 : i32
    %74 = tpu.dynamic_rotate %67 by %c15_i32_35 dim 1 : vector<8x256xf32>, i32 -> vector<8x256xf32>
    %75 = vector.broadcast %9 : vector<1x256xf32> to vector<8x256xf32>
    %76 = arith.mulf %74, %75 : vector<8x256xf32>
    %c1_i32_36 = arith.constant 1 : i32
    %77 = tpu.dynamic_rotate %67 by %c1_i32_36 dim 1 : vector<8x256xf32>, i32 -> vector<8x256xf32>
    %78 = vector.broadcast %11 : vector<1x256xf32> to vector<8x256xf32>
    %79 = arith.mulf %77, %78 : vector<8x256xf32>
    %c255_i32_37 = arith.constant 255 : i32
    %80 = tpu.dynamic_rotate %67 by %c255_i32_37 dim 1 : vector<8x256xf32>, i32 -> vector<8x256xf32>
    %81 = vector.broadcast %13 : vector<1x256xf32> to vector<8x256xf32>
    %82 = arith.mulf %80, %81 : vector<8x256xf32>
    %c241_i32_38 = arith.constant 241 : i32
    %83 = tpu.dynamic_rotate %67 by %c241_i32_38 dim 1 : vector<8x256xf32>, i32 -> vector<8x256xf32>
    %84 = vector.broadcast %15 : vector<1x256xf32> to vector<8x256xf32>
    %85 = arith.mulf %83, %84 : vector<8x256xf32>
    %c240_i32_39 = arith.constant 240 : i32
    %86 = tpu.dynamic_rotate %67 by %c240_i32_39 dim 1 : vector<8x256xf32>, i32 -> vector<8x256xf32>
    %87 = vector.broadcast %17 : vector<1x256xf32> to vector<8x256xf32>
    %88 = arith.mulf %86, %87 : vector<8x256xf32>
    %c239_i32_40 = arith.constant 239 : i32
    %89 = tpu.dynamic_rotate %67 by %c239_i32_40 dim 1 : vector<8x256xf32>, i32 -> vector<8x256xf32>
    %90 = vector.broadcast %19 : vector<1x256xf32> to vector<8x256xf32>
    %91 = arith.mulf %89, %90 : vector<8x256xf32>
    %92 = tpu.concatenate %70, %73, %76, %79, %67, %82, %85, %88, %91 in 0 : vector<8x256xf32>, vector<8x256xf32>, vector<8x256xf32>, vector<8x256xf32>, vector<8x256xf32>, vector<8x256xf32>, vector<8x256xf32>, vector<8x256xf32>, vector<8x256xf32> -> vector<72x256xf32>
    %cst_41 = arith.constant dense<0.000000e+00> : vector<8x256xf32>
    %93 = tpu.matmul %1, %92, %cst_41 {dimension_numbers = #tpu.dot_dimension_numbers<[1], [0], [0], [1], [0, 0, 1, 1], [], []>} : vector<8x72xf32>, vector<72x256xf32>, vector<8x256xf32> -> vector<8x256xf32>
    %94 = vector.broadcast %3 : vector<8x1xf32> to vector<8x256xf32>
    %95 = arith.addf %93, %94 : vector<8x256xf32>
    %cst_42 = arith.constant dense<0.000000e+00> : vector<8xf32>
    %96 = vector.multi_reduction <add>, %95, %cst_42 [1] : vector<8x256xf32> to vector<8xf32>
    %97 = vector.shape_cast %96 : vector<8xf32> to vector<8x1xf32>
    %cst_43 = arith.constant 2.560000e+02 : f32
    %98 = vector.broadcast %cst_43 : f32 to vector<8x1xf32>
    %99 = arith.divf %97, %98 : vector<8x1xf32>
    %100 = vector.broadcast %99 : vector<8x1xf32> to vector<8x256xf32>
    %101 = arith.subf %95, %100 : vector<8x256xf32>
    %102 = arith.mulf %101, %101 : vector<8x256xf32>
    %cst_44 = arith.constant dense<0.000000e+00> : vector<8xf32>
    %103 = vector.multi_reduction <add>, %102, %cst_44 [1] : vector<8x256xf32> to vector<8xf32>
    %104 = vector.shape_cast %103 : vector<8xf32> to vector<8x1xf32>
    %cst_45 = arith.constant 2.560000e+02 : f32
    %105 = vector.broadcast %cst_45 : f32 to vector<8x1xf32>
    %106 = arith.divf %104, %105 : vector<8x1xf32>
    %cst_46 = arith.constant 9.99999974E-6 : f32
    %107 = vector.broadcast %cst_46 : f32 to vector<8x1xf32>
    %108 = arith.addf %106, %107 : vector<8x1xf32>
    %109 = math.rsqrt %108 : vector<8x1xf32>
    %110 = vector.broadcast %109 : vector<8x1xf32> to vector<8x256xf32>
    %111 = arith.mulf %101, %110 : vector<8x256xf32>
    %112 = arith.addf %111, %21 : vector<8x256xf32>
    %cst_47 = arith.constant 0.000000e+00 : f32
    %113 = vector.broadcast %cst_47 : f32 to vector<8x256xf32>
    %114 = arith.maximumf %112, %113 : vector<8x256xf32>
    %c0_48 = arith.constant 0 : index
    %c0_49 = arith.constant 0 : index
    %c0_50 = arith.constant 0 : index
    %115 = vector.load %arg7[%c0_48, %c0_49, %c0_50] : memref<1x8x256xf32, #tpu.memory_space<vmem>>, vector<1x8x256xf32>
    %116 = vector.shape_cast %115 : vector<1x8x256xf32> to vector<8x256xf32>
    %117 = vector.shape_cast %114 : vector<8x256xf32> to vector<1x8x256xf32>
    tpu.vector_store %arg7[%c0_48, %c0_49, %c0_50], %117 {strides = array<i32>} : memref<1x8x256xf32, #tpu.memory_space<vmem>>, vector<1x8x256xf32>,
    return
  }
  func.func @transform_0(%arg0: i32) -> (i32, i32, i32) {
    %c0_i32 = arith.constant 0 : i32
    %c0_i32_0 = arith.constant 0 : i32
    %c0_i32_1 = arith.constant 0 : i32
    return %arg0, %c0_i32, %c0_i32_0 : i32, i32, i32
  }
  func.func @transform_1(%arg0: i32) -> (i32, i32) {
    %c0_i32 = arith.constant 0 : i32
    %c0_i32_0 = arith.constant 0 : i32
    %c0_i32_1 = arith.constant 0 : i32
    return %c0_i32, %c0_i32_0 : i32, i32
  }
  func.func @transform_2(%arg0: i32) -> (i32, i32) {
    %c0_i32 = arith.constant 0 : i32
    %c0_i32_0 = arith.constant 0 : i32
    %c0_i32_1 = arith.constant 0 : i32
    return %c0_i32, %c0_i32_0 : i32, i32
  }
  func.func @transform_3(%arg0: i32) -> (i32, i32) {
    %c0_i32 = arith.constant 0 : i32
    %c0_i32_0 = arith.constant 0 : i32
    %c0_i32_1 = arith.constant 0 : i32
    return %c0_i32, %c0_i32_0 : i32, i32
  }
  func.func @transform_4(%arg0: i32) -> (i32, i32) {
    %c0_i32 = arith.constant 0 : i32
    %c0_i32_0 = arith.constant 0 : i32
    %c0_i32_1 = arith.constant 0 : i32
    return %c0_i32, %c0_i32_0 : i32, i32
  }
  func.func @transform_5(%arg0: i32) -> (i32, i32, i32) {
    %c0_i32 = arith.constant 0 : i32
    %c0_i32_0 = arith.constant 0 : i32
    %c0_i32_1 = arith.constant 0 : i32
    %c0_i32_2 = arith.constant 0 : i32
    return %c0_i32, %c0_i32_0, %c0_i32_1 : i32, i32, i32
  }
  func.func @transform_6(%arg0: i32) -> (i32, i32, i32) {
    %c0_i32 = arith.constant 0 : i32
    %c0_i32_0 = arith.constant 0 : i32
    %c0_i32_1 = arith.constant 0 : i32
    return %arg0, %c0_i32, %c0_i32_0 : i32, i32, i32
  }
}

</mosaic_0001>

<bundles_post_ra>
// kernel: tpu_custom_call.1
= control target key start
LH: loop header
LB: loop body
LE: loop exit
PB: predicated region body
PF: predicated region fallthrough
CT: control target
= control target key end

     0   :  { %11 = vsyncpa [#allocation3], 0  ;;  %s1491_s0 = inlined_call_operand.hbm [shape: f32[2,8,256], index: 0, kind: input, shape index: {}]   ;;  %s1492_s1 = inlined_call_operand.vmem [shape: f32[8,72], index: 1, kind: input, shape index: {}]   ;;  %s1493_s2 = inlined_call_operand.vmem [shape: f32[8,1], index: 2, kind: input, shape index: {}]   ;;  %s1494_s3 = inlined_call_operand.vmem [shape: f32[8,72], index: 3, kind: input, shape index: {}]   ;;  %s1495_s4 = inlined_call_operand.vmem [shape: f32[8,1], index: 4, kind: input, shape index: {}]   ;;  %s1496_s5 = inlined_call_operand.vmem [shape: f32[9,1,256], index: 5, kind: input, shape index: {}]   ;;  %s1497_s6 = inlined_call_operand.hbm [shape: f32[2,8,256], index: 6, kind: output, shape index: {}]  }
   0x1   :  { %13 = vsyncpa [#allocation3 + $0x1], 0 }
   0x2   :  { %14 = vsyncpa [#allocation4], 0 }
   0x3   :  { %16 = vsyncpa [#allocation4 + $0x1], 0  ;;  %s1063_s21 = smov 0   ;;  %s1065_s22 = smov 0  }
   0x4   :  { %s1067_s23 = smov 0   ;;  %s1069_s24 = smov 0  }
   0x5 LB: > { %s1084_s25 = sadd.s32 4294967295, %s1014_s24   ;;  %s800_s26 = sadd.s32 4294967294, %s1014_s24   ;;  %s1014_s24 = sphi %s1069_s24, %s1514_s24   ;;  %s1010_s23 = sphi %s1067_s23, %s1513_s23   ;;  %s1006_s22 = sphi %s1065_s22, %s1512_s22   ;;  %s1002_s21 = sphi %s1063_s21, %s1511_s21  }
   0x6   : > { %s1088_s27 = sadd.s32 1, %s1014_s24   ;;  %s29_s28 = sadd.s32 1, %s1010_s23 }
   0x7   : > { %s26_s29 = ssub.s32 %s1014_s24, %s1088_s27  ;;  %p36_p0 = scmp.ne.s32.totalorder %s1010_s23, %s1006_s22 }
   0x8   : > { %p27_p1 = scmp.eq.s32.totalorder %s26_s29, 0  ;;  %p37_p2 = scmp.eq.s32.totalorder %s1014_s24, 0 }
   0x9   : > { %p42_p3 = scmp.ne.s32.totalorder %s1006_s22, %s1002_s21  ;;  %p43_p4 = scmp.eq.s32.totalorder %s1084_s25, 0 }
   0xa   : > { %s1100_s30 = scalar_select %p27_p1, %s1010_s23, %s29_s28  }
   0xb   : > { %p1102_p5 = por %p37_p2, %p36_p0  ;;  %p1106_p6 = por %p43_p4, %p42_p3 }
   0xc   : > { %p171_p7 = scmp.eq.s32.totalorder %s1084_s25, 1  ;;  %p177_p8 = scmp.eq.s32.totalorder %s800_s26, 1 }
   0xd   : > { %p869_p10 = scmp.lt.s32.totalorder %s1014_s24, 2  ;;  %s212_s11 = sand.u32 1, %s1010_s23  }
   0xe   : > { %p1113_p11 = por %p171_p7, %p36_p0  ;;  %p1117_p12 = por %p177_p8, %p42_p3 }
   0xf   : > { %s823_s12 = sshll.u32 %s1014_s24, 8  ;;  %s803_s13 = sshll.u32 %s212_s11, 4 }
  0x10   : > { %s1502_s9 = scalar_select %p1113_p11, 1, 0 }
  0x11   : > { %s1503_s10 = scalar_select %p1117_p12, 1, 0 }
  0x12   : > { %s1126_s16 = scalar_lea.hbm %s1491_s0, %s823_s12  ;;  %s216_s17 = scalar_lea.vmem [#allocation2], %s803_s13 }
  0x13   : > { %s224_s18 = sshll.u32 %s216_s17, 4  ;;  %p1130_p13 = pnand %p869_p10, %p1102_p5  ;;  %s1134_s18 = int_to_ptr.vmem [resolvable:$true] %s224_s18 }
  0x14   : > { %s213_s20 = scalar_lea.sflag [#allocation3], %s212_s11  ;;  %s918_s26 = scalar_lea.hbm %s1126_s16, 256 }
  0x15   : > { %p919_p2 = scmp.ne.s32.totalorder %s1126_s16, %s918_s26  ;;  %p920_p3 = pneg %p1130_p13 }
  0x16   : > { %s923_s7 = scalar_lea.hbm %s1491_s0, 512  ;;  %p924_p5 = scmp.lt.u32.totalorder %s1126_s16, %s1491_s0 }
  0x17   : > { %p921_p4 = pnand %p920_p3, %p919_p2  ;;  %p925_p8 = scmp.lt.u32.totalorder %s923_s7, %s918_s26 }
  0x18   : > { %p927_p9 = scmp.lt.u32.totalorder %s918_s26, %s1126_s16 }
  0x19   : > { %p922_p7 = pneg %p921_p4  ;;  %p926_p10 = por %p925_p8, %p924_p5 }
  0x1b   : > { %p928_p0 = por %p927_p9, %p926_p10 }
  0x1d   : > { %p929_p1 = pnand %p928_p0, %p922_p7 }
  0x1f   : > { %932 = shalt.err (!%p929_p1)
}
  0x20   : > { %s933_s11 = scalar_lea.vmem %s1134_s18, 256  ;;  %s1016_s14 = smov [#allocation2]  }
  0x21   : > { %p934_p2 = scmp.ne.s32.totalorder %s1134_s18, %s933_s11  ;;  %s938_s15 = sshll.u32 %s1016_s14, 4  ;;  %s939_s15 = int_to_ptr.vmem [resolvable:$false] %s938_s15 }
  0x22   : > { %s940_s17 = scalar_lea.vmem %s939_s15, 512  ;;  %p941_p11 = scmp.lt.s32.totalorder %s1134_s18, %s939_s15 }
  0x23   : > { %p936_p4 = pnand %p934_p2, %p920_p3  ;;  %p942_p5 = scmp.lt.s32.totalorder %s940_s17, %s933_s11 }
  0x25   : > { %p937_p12 = pneg %p936_p4  ;;  %p943_p8 = por %p942_p5, %p941_p11 }
  0x27   : > { %p944_p9 = pnand %p943_p8, %p937_p12 }
  0x29   : > { %947 = shalt.err (!%p944_p9)
}
  0x2a   : > { %864 = dma.hbm_to_vmem [thread:$0]  (!%p1130_p13), %s1126_s16, 256, %s1134_s18, %s213_s20  }
  0x2b   : > { %p1505_p0 = scmp.lt.s32.totalorder %s1014_s24, 3  ;;  %p1506_p1 = scmp.ge.s32.totalorder %s1014_s24, 1 }
  0x2d   : > { %p230_p3 = pnand %p1506_p1, %p1505_p0 }
  0x2e   : > { %s1168_s26 = sand.u32 (!%p230_p3), 1, %s1006_s22  }
  0x2f   : > { %233 = sbr.rel (%p230_p3) target bundleno = 1432 (0x598), region = 44  ;;  %s1499_s28 = sshll.u32 (!%p230_p3), %s1168_s26, 4 }
  0x30   : > { %s236_s29 = scalar_lea.sflag (!%p230_p3), [#allocation3], %s1168_s26  ;;  %s239_s19 = scalar_lea.vmem (!%p230_p3), [#allocation2], %s1499_s28 }
  0x36   : > { %993 = dma.done.wait (%p1106_p6), %s236_s29, 256  }
  0x37   : > { %995 = vsyncadd (%p1106_p6), %s236_s29, 4294967040  ;;  %v1178_v0 = vld [vmem:[%s239_s19] sm:$0xff]  ;;  %s1017_s16 = smov 16   ;;  %s1018_s18 = smov 17   ;;  %v1184_v1 = vld [vmem:[%s239_s19 + $0x8] sm:$0xff]  ;;  %v1023_v2 = vmov 0.0   ;;  %v293_v5 = vlaneseq }
  0x38   : > { %311 = vrot.lane.b32.xlu1 %v1178_v0, %s1017_s16  ;;  %289 = vrot.lane.b32.xlu0 %v1178_v0, %s1018_s18  ;;  %s1019_s8 = smov 15   ;;  %s1020_s20 = smov 1   ;;  %v1024_v3 = vmov 0   ;;  %v270_v4 = vld [vmem:[%s1493_s2] sm:$0xff]  ;;  %v812_v38 = vld [vmem:[%s1496_s5 + $0xa] sm:$0x3] }
  0x39   : > { %s1021_s7 = smov 127   ;;  %s1022_s12 = smov 113   ;;  %524 = vmatprep.mubr.f32.mxu0 %v1023_v2  ;;  %686 = vmatprep.mubr.f32.mxu1 %v1023_v2  ;;  %v300_v6 = vshrl.u32 %v293_v5, 7  ;;  %v1217_v7 = vand.u32 127, %v293_v5  ;;  %v809_v10 = vld [vmem:[%s1496_s5 + $0x2] sm:$0x3] }
  0x3a   : > { %913 = vset.pattern.permute.xlu0 %v1024_v3  ;;  %s1025_s13 = smov 112   ;;  %s1026_s11 = smov 111   ;;  %v272_v11 = vld [vmem:[%s1496_s5] sm:$0x3]  ;;  %v810_v28 = vld [vmem:[%s1496_s5 + $0x4] sm:$0x3] }
  0x3b   : > { %v1219_v8 = vsub.s32 0, %v300_v6  ;;  %v1221_v9 = vsub.s32 1, %v300_v6  ;;  %vm315_vm0 = vcmp.lt.s32.totalorder %v1217_v7, 16  ;;  %vm295_vm1 = vcmp.lt.s32.totalorder %v1217_v7, 17  ;;  %v811_v29 = vld [vmem:[%s1496_s5 + $0x6] sm:$0x3] }
  0x3c   : > { %313 = vrot.lane.b32.xlu1 %v1184_v1, %s1017_s16  ;;  %291 = vrot.lane.b32.xlu0 %v1184_v1, %s1018_s18  ;;  %vm335_vm2 = vcmp.lt.s32.totalorder %v1217_v7, 15  ;;  %vm355_vm3 = vcmp.lt.s32.totalorder %v1217_v7, 1  ;;  %vm375_vm4 = vcmp.lt.s32.totalorder %v1217_v7, 127  ;;  %v813_v59 = vld [vmem:[%s1496_s5 + $0xc] sm:$0x3]  ;;  %vm395_vm5 = vcmp.lt.s32.totalorder %v1217_v7, 113 }
  0x3d   : > { %v1232_v14 = vrot.slane %v809_v10, %v1219_v8  ;;  %v1235_v15 = vrot.slane %v272_v11, %v1219_v8  ;;  %v1238_v16 = vrot.slane %v272_v11, %v1221_v9  ;;  %v1241_v17 = vrot.slane %v809_v10, %v1221_v9  ;;  %v814_v60 = vld [vmem:[%s1496_s5 + $0xe] sm:$0x3]  ;;  %v815_v10 = vld [vmem:[%s1496_s5 + $0x10] sm:$0x3]  ;;  %p1508_p11 = scmp.ne.s32.totalorder %s1502_s9, 0  ;;  %s1027_s28 = smov [#allocation5]  }
  0x3e   : > { %v1264_v34 = vrot.slane %v810_v28, %v1219_v8  ;;  %v1267_v35 = vrot.slane %v810_v28, %v1221_v9  ;;  %v1270_v36 = vrot.slane %v811_v29, %v1219_v8  ;;  %v1273_v37 = vrot.slane %v811_v29, %v1221_v9  ;;  %s952_s14 = sshll.u32 %s1027_s28, 4  ;;  %s953_s14 = int_to_ptr.vmem [resolvable:$false] %s952_s14 }
  0x3f   : > { %v1288_v45 = vrot.slane %v812_v38, %v1219_v8  ;;  %v1291_v46 = vrot.slane %v812_v38, %v1221_v9  ;;  %v1313_v3 = vrot.slane %v813_v59, %v1219_v8  ;;  %vm415_vm6 = vcmp.lt.s32.totalorder %v1217_v7, 112 }
  0x40   : > { %333 = vrot.lane.b32.xlu1 %v1184_v1, %s1019_s8  ;;  %331 = vrot.lane.b32.xlu0 %v1178_v0, %s1019_s8  ;;  %v1320_v5 = vrot.slane %v814_v60, %v1219_v8  ;;  %v1323_v6 = vrot.slane %v814_v60, %v1221_v9  ;;  %vm435_vm7 = vcmp.lt.s32.totalorder %v1217_v7, 111  ;;  %vm456_vm8 = vcmask 588800  }
  0x44   : > { %353 = vrot.lane.b32.xlu1 %v1184_v1, %s1020_s20  ;;  %351 = vrot.lane.b32.xlu0 %v1178_v0, %s1020_s20 }
  0x48   : > { %373 = vrot.lane.b32.xlu1 %v1184_v1, %s1021_s7  ;;  %371 = vrot.lane.b32.xlu0 %v1178_v0, %s1021_s7 }
  0x4c   : > { %393 = vrot.lane.b32.xlu1 %v1184_v1, %s1022_s12  ;;  %391 = vrot.lane.b32.xlu0 %v1178_v0, %s1022_s12 }
  0x50   : > { %413 = vrot.lane.b32.xlu1 %v1184_v1, %s1025_s13  ;;  %411 = vrot.lane.b32.xlu0 %v1178_v0, %s1025_s13 }
  0x54   : > { %433 = vrot.lane.b32.xlu1 %v1184_v1, %s1026_s11  ;;  %431 = vrot.lane.b32.xlu0 %v1178_v0, %s1026_s11 }
  0x58   : > { %453 = vperm.xlu0 %913, %v270_v4   ;;  %v1316_v4 = vrot.slane %v813_v59, %v1221_v9 }
  0xaa   : > { %v312_v12 = vpop.permute.xlu1 %311  ;;  %v290_v13 = vpop.permute.xlu0 %289 }
  0xae   : > { %v314_v18 = vpop.permute.xlu1 %313  ;;  %v292_v19 = vpop.permute.xlu0 %291 }
  0xaf   : > { %v316_v20 = vsel %vm315_vm0, %v312_v12, %v314_v18  ;;  %v317_v21 = vsel %vm315_vm0, %v314_v18, %v312_v12  ;;  %v296_v22 = vsel %vm295_vm1, %v290_v13, %v292_v19  ;;  %v297_v23 = vsel %vm295_vm1, %v292_v19, %v290_v13 }
  0xb0   : > { %v329_v24 = vmul.f32 %v1232_v14, %v317_v21  ;;  %v309_v25 = vmul.f32 %v1235_v15, %v297_v23  ;;  %v310_v26 = vmul.f32 %v1238_v16, %v296_v22  ;;  %v330_v27 = vmul.f32 %v1241_v17, %v316_v20 }
  0xb1   : > { %v1338_v21 = vrot.slane %v815_v10, %v1221_v9 }
  0xb2   : > { %v334_v30 = vpop.permute.xlu1 %333  ;;  %v332_v31 = vpop.permute.xlu0 %331  ;;  %v825_v32 = vpack.c.bf16 %v330_v27, %v310_v26  ;;  %v827_v33 = vpack.c.bf16 %v329_v24, %v309_v25  ;;  %v1345_v26 = vrot.slane %v815_v10, %v1219_v8  ;;  %v268_v8 = vld [vmem:[%s1492_s1] sm:$0xff] }
  0xb3   : > { %v336_v39 = vsel %vm335_vm2, %v332_v31, %v334_v30  ;;  %v337_v40 = vsel %vm335_vm2, %v334_v30, %v332_v31 }
  0xb4   : > { %826 = vmatprep.subr.bf16.mxu0 %v825_v32  ;;  %v349_v47 = vmul.f32 %v1264_v34, %v337_v40  ;;  %v350_v48 = vmul.f32 %v1267_v35, %v336_v39 }
  0xb5   : > { %828 = vmatpush1.bf16.msra.mxu0 %v827_v33 }
  0xb6   : > { %v354_v41 = vpop.permute.xlu1 %353  ;;  %v352_v42 = vpop.permute.xlu0 %351 }
  0xb7   : > { %v356_v43 = vsel %vm355_vm3, %v352_v42, %v354_v41  ;;  %v357_v44 = vsel %vm355_vm3, %v354_v41, %v352_v42 }
  0xb8   : > { %v369_v49 = vmul.f32 %v1270_v36, %v357_v44  ;;  %v370_v50 = vmul.f32 %v1273_v37, %v356_v43 }
  0xba   : > { %v374_v51 = vpop.permute.xlu1 %373  ;;  %v372_v52 = vpop.permute.xlu0 %371  ;;  %v829_v53 = vpack.c.bf16 %v370_v50, %v350_v48  ;;  %v831_v54 = vpack.c.bf16 %v369_v49, %v349_v47 }
  0xbb   : > { %v376_v55 = vsel %vm375_vm4, %v372_v52, %v374_v51  ;;  %v377_v56 = vsel %vm375_vm4, %v374_v51, %v372_v52 }
  0xbc   : > { %v389_v57 = vmul.f32 %v1288_v45, %v376_v55  ;;  %v390_v58 = vmul.f32 %v1291_v46, %v377_v56  ;;  %830 = vmatprep.subr.bf16.mxu0 %v829_v53 }
  0xbd   : > { %832 = vmatpush1.bf16.msra.mxu0 %v831_v54 }
  0xbe   : > { %v394_v61 = vpop.permute.xlu1 %393  ;;  %v392_v62 = vpop.permute.xlu0 %391  ;;  %v833_v63 = vpack.c.bf16 %v390_v58, %v1184_v1  ;;  %v835_v2 = vpack.c.bf16 %v389_v57, %v1178_v0 }
  0xbf   : > { %v396_v11 = vsel %vm395_vm5, %v392_v62, %v394_v61  ;;  %v397_v12 = vsel %vm395_vm5, %v394_v61, %v392_v62  ;;  %v271_v61 = vld [vmem:[%s1495_s4] sm:$0xff] }
  0xc0   : > { %834 = vmatprep.subr.bf16.mxu0 %v833_v63  ;;  %v409_v22 = vmul.f32 %v1313_v3, %v396_v11  ;;  %v410_v23 = vmul.f32 %v1316_v4, %v397_v12 }
  0xc1   : > { %836 = vmatpush1.bf16.msra.mxu0 %v835_v2 }
  0xc2   : > { %v414_v13 = vpop.permute.xlu1 %413  ;;  %v412_v18 = vpop.permute.xlu0 %411 }
  0xc3   : > { %v416_v19 = vsel %vm415_vm6, %v412_v18, %v414_v13  ;;  %v417_v20 = vsel %vm415_vm6, %v414_v13, %v412_v18 }
  0xc4   : > { %v429_v24 = vmul.f32 %v1320_v5, %v416_v19  ;;  %v430_v25 = vmul.f32 %v1323_v6, %v417_v20 }
  0xc6   : > { %v434_v27 = vpop.permute.xlu1 %433  ;;  %v432_v28 = vpop.permute.xlu0 %431  ;;  %v837_v29 = vpack.c.bf16 %v430_v25, %v410_v23  ;;  %v839_v30 = vpack.c.bf16 %v429_v24, %v409_v22 }
  0xc7   : > { %v436_v31 = vsel %vm435_vm7, %v432_v28, %v434_v27  ;;  %v437_v9 = vsel %vm435_vm7, %v434_v27, %v432_v28 }
  0xc8   : > { %v450_v32 = vmul.f32 %v1338_v21, %v437_v9  ;;  %838 = vmatprep.subr.bf16.mxu0 %v837_v29  ;;  %v449_v33 = vmul.f32 %v1345_v26, %v436_v31 }
  0xc9   : > { %840 = vmatpush1.bf16.msra.mxu0 %v839_v30 }
  0xca   : > { %476 = vmatprep.subr.mxu0 %v450_v32 }
  0xcd   : > { %477 = vmatpush1.msra.mxu0 %v449_v33 }
  0xce   : > { %816 = vmatmul.mubr.msk.f32.vlgmr.msra.gmra.mrb[0].mxu0 %vm456_vm8, %v268_v8 }
  0xd7   : > { %v454_v38 = vpop.permute.xlu0 %453 }
 0x1a1   : > { %v526_v39 = vpop.f32.mrb[0].mxu0 }
 0x1a2   : > { %v527_v40 = vadd.f32 %v526_v39, %v454_v38  ;;  %v528_v41 = vpop.f32.mrb[1].mxu0 }
 0x1a3   : > { %v529_v42 = vadd.f32 %v528_v41, %v454_v38 }
 0x1a5   : > { %v531_v43 = vadd.f32 %v529_v42, %v527_v40 }
 0x1a7   : > { %532 = vadd.xlane.f32.xlu1 %v531_v43 }
 0x234   : > { %v533_v44 = vpop.xlane.xlu1 %532 }
 0x235   : > { %v535_v47 = vmul.f32 0.00390625, %v533_v44 }
 0x237   : > { %v536_v48 = vsub.f32 %v527_v40, %v535_v47  ;;  %v537_v49 = vsub.f32 %v529_v42, %v535_v47 }
 0x239   : > { %v538_v50 = vmul.f32 %v536_v48, %v536_v48  ;;  %v539_v51 = vmul.f32 %v537_v49, %v537_v49 }
 0x23b   : > { %v540_v52 = vadd.f32 %v539_v51, %v538_v50 }
 0x23d   : > { %541 = vadd.xlane.f32.xlu0 %v540_v52 }
 0x2ca   : > { %v542_v53 = vpop.xlane.xlu0 %541 }
 0x2cb   : > { %v543_v54 = vmul.f32 0.00390625, %v542_v53 }
 0x2cd   : > { %v544_v55 = vadd.f32 1e-05, %v543_v54 }
 0x2cf   : > { %914 = vrsqrt.f32 %v544_v55 }
 0x2d9   : > { %v915_v56 = vpop.eup %914 }
 0x2da   : > { %v546_v57 = vmul.f32 %v915_v56, %v536_v48  ;;  %v547_v58 = vmul.f32 %v915_v56, %v537_v49 }
 0x2dc   : > { %v1357_v59 = vmax.f32 %v546_v57, 0.0  ;;  %v549_v60 = vmax.f32 %v547_v58, 0.0 }
 0x2de   : > { %552 = vrot.lane.b32.xlu0 %v549_v60, %s1018_s18  ;;  %550 = vrot.lane.b32.xlu1 %v1357_v59, %s1018_s18 }
 0x2e2   : > { %566 = vrot.lane.b32.xlu0 %v1357_v59, %s1019_s8  ;;  %558 = vrot.lane.b32.xlu1 %v1357_v59, %s1017_s16 }
 0x2e6   : > { %574 = vrot.lane.b32.xlu0 %v1357_v59, %s1020_s20  ;;  %560 = vrot.lane.b32.xlu1 %v549_v60, %s1017_s16  ;;  %s954_s16 = scalar_lea.vmem %s953_s14, 512 }
 0x2ea   : > { %582 = vrot.lane.b32.xlu0 %v1357_v59, %s1021_s7  ;;  %568 = vrot.lane.b32.xlu1 %v549_v60, %s1019_s8 }
 0x2ee   : > { %590 = vrot.lane.b32.xlu0 %v1357_v59, %s1022_s12  ;;  %576 = vrot.lane.b32.xlu1 %v549_v60, %s1020_s20 }
 0x2f2   : > { %598 = vrot.lane.b32.xlu0 %v1357_v59, %s1025_s13  ;;  %584 = vrot.lane.b32.xlu1 %v549_v60, %s1021_s7  ;;  %s824_s7 = sshll.u32 %s1084_s25, 8  ;;  %s716_s25 = scalar_lea.sflag [#allocation4], %s1168_s26 }
 0x2f3   : > { %s1447_s29 = scalar_lea.hbm %s1497_s6, %s824_s7 }
 0x2f6   : > { %606 = vrot.lane.b32.xlu0 %v1357_v59, %s1026_s11  ;;  %592 = vrot.lane.b32.xlu1 %v549_v60, %s1022_s12  ;;  %s1507_s12 = sshll.u32 %s1168_s26, 4 }
 0x2fa   : > { %616 = vperm.xlu0 %913, %v271_v61   ;;  %600 = vrot.lane.b32.xlu1 %v549_v60, %s1025_s13  ;;  %s267_s13 = scalar_lea.vmem [#allocation5], %s1507_s12 }
 0x2fe   : > { %608 = vrot.lane.b32.xlu1 %v549_v60, %s1026_s11  ;;  %s730_s11 = sshll.u32 %s267_s13, 4  ;;  %s1449_s11 = int_to_ptr.vmem [resolvable:$true] %s730_s11 }
 0x2ff   : > { %s948_s19 = scalar_lea.vmem %s1449_s11, 256  ;;  %p955_p7 = scmp.lt.s32.totalorder %s1449_s11, %s953_s14 }
 0x300   : > { %p949_p6 = scmp.ne.s32.totalorder %s1449_s11, %s948_s19  ;;  %p956_p10 = scmp.lt.s32.totalorder %s954_s16, %s948_s19 }
 0x302   : > { %p950_p12 = pnand %p949_p6, %p1508_p11  ;;  %p957_p2 = por %p956_p10, %p955_p7 }
 0x304   : > { %p951_p13 = pneg %p950_p12 }
 0x306   : > { %p958_p4 = pnand %p957_p2, %p951_p13 }
 0x350   : > { %v553_v62 = vpop.permute.xlu0 %552  ;;  %v551_v63 = vpop.permute.xlu1 %550 }
 0x351   : > { %v554_v11 = vsel %vm295_vm1, %v551_v63, %v553_v62  ;;  %v555_v12 = vsel %vm295_vm1, %v553_v62, %v551_v63 }
 0x352   : > { %v556_v22 = vmul.f32 %v555_v12, %v1235_v15  ;;  %v557_v24 = vmul.f32 %v554_v11, %v1238_v16 }
 0x354   : > { %v567_v2 = vpop.permute.xlu0 %566  ;;  %v559_v10 = vpop.permute.xlu1 %558 }
 0x358   : > { %v575_v13 = vpop.permute.xlu0 %574  ;;  %v561_v18 = vpop.permute.xlu1 %560 }
 0x359   : > { %v562_v19 = vsel %vm315_vm0, %v559_v10, %v561_v18  ;;  %v563_v20 = vsel %vm315_vm0, %v561_v18, %v559_v10 }
 0x35a   : > { %v564_v23 = vmul.f32 %v563_v20, %v1232_v14  ;;  %v565_v25 = vmul.f32 %v562_v19, %v1241_v17 }
 0x35c   : > { %v569_v27 = vpop.permute.xlu1 %568  ;;  %v841_v28 = vpack.c.bf16 %v565_v25, %v557_v24  ;;  %v843_v29 = vpack.c.bf16 %v564_v23, %v556_v22  ;;  %v583_v30 = vpop.permute.xlu0 %582 }
 0x35d   : > { %v570_v31 = vsel %vm335_vm2, %v567_v2, %v569_v27  ;;  %v571_v9 = vsel %vm335_vm2, %v569_v27, %v567_v2 }
 0x35e   : > { %842 = vmatprep.subr.bf16.mxu1 %v841_v28  ;;  %v572_v16 = vmul.f32 %v571_v9, %v1264_v34  ;;  %v573_v17 = vmul.f32 %v570_v31, %v1267_v35 }
 0x35f   : > { %844 = vmatpush1.bf16.msra.mxu1 %v843_v29 }
 0x360   : > { %v577_v32 = vpop.permute.xlu1 %576  ;;  %v591_v38 = vpop.permute.xlu0 %590 }
 0x361   : > { %v578_v14 = vsel %vm355_vm3, %v575_v13, %v577_v32  ;;  %v579_v15 = vsel %vm355_vm3, %v577_v32, %v575_v13 }
 0x362   : > { %v580_v33 = vmul.f32 %v579_v15, %v1270_v36  ;;  %v581_v8 = vmul.f32 %v578_v14, %v1273_v37 }
 0x364   : > { %v585_v39 = vpop.permute.xlu1 %584  ;;  %v845_v40 = vpack.c.bf16 %v581_v8, %v573_v17  ;;  %v847_v41 = vpack.c.bf16 %v580_v33, %v572_v16  ;;  %v599_v47 = vpop.permute.xlu0 %598 }
 0x365   : > { %v586_v42 = vsel %vm375_vm4, %v583_v30, %v585_v39  ;;  %v587_v43 = vsel %vm375_vm4, %v585_v39, %v583_v30 }
 0x366   : > { %v588_v44 = vmul.f32 %v586_v42, %v1288_v45  ;;  %v589_v34 = vmul.f32 %v587_v43, %v1291_v46  ;;  %846 = vmatprep.subr.bf16.mxu1 %v845_v40 }
 0x367   : > { %848 = vmatpush1.bf16.msra.mxu1 %v847_v41 }
 0x368   : > { %v593_v35 = vpop.permute.xlu1 %592  ;;  %v849_v36 = vpack.c.bf16 %v589_v34, %v549_v60  ;;  %v851_v37 = vpack.c.bf16 %v588_v44, %v1357_v59  ;;  %v607_v55 = vpop.permute.xlu0 %606 }
 0x369   : > { %v594_v48 = vsel %vm395_vm5, %v591_v38, %v593_v35  ;;  %v595_v49 = vsel %vm395_vm5, %v593_v35, %v591_v38 }
 0x36a   : > { %850 = vmatprep.subr.bf16.mxu1 %v849_v36  ;;  %v596_v51 = vmul.f32 %v594_v48, %v1313_v3  ;;  %v597_v52 = vmul.f32 %v595_v49, %v1316_v4  ;;  %v269_v4 = vld [vmem:[%s1494_s3] sm:$0xff] }
 0x36b   : > { %852 = vmatpush1.bf16.msra.mxu1 %v851_v37 }
 0x36c   : > { %v601_v50 = vpop.permute.xlu1 %600 }
 0x36d   : > { %v602_v45 = vsel %vm415_vm6, %v599_v47, %v601_v50  ;;  %v603_v46 = vsel %vm415_vm6, %v601_v50, %v599_v47 }
 0x36e   : > { %v604_v53 = vmul.f32 %v602_v45, %v1320_v5  ;;  %v605_v54 = vmul.f32 %v603_v46, %v1323_v6 }
 0x370   : > { %v609_v56 = vpop.permute.xlu1 %608  ;;  %v853_v57 = vpack.c.bf16 %v605_v54, %v597_v52  ;;  %v855_v58 = vpack.c.bf16 %v604_v53, %v596_v51 }
 0x371   : > { %v611_v59 = vsel %vm435_vm7, %v609_v56, %v607_v55  ;;  %v610_v60 = vsel %vm435_vm7, %v607_v55, %v609_v56 }
 0x372   : > { %v613_v61 = vmul.f32 %v611_v59, %v1338_v21  ;;  %854 = vmatprep.subr.bf16.mxu1 %v853_v57  ;;  %v612_v3 = vmul.f32 %v610_v60, %v1345_v26 }
 0x373   : > { %856 = vmatpush1.bf16.msra.mxu1 %v855_v58 }
 0x374   : > { %638 = vmatprep.subr.mxu1 %v613_v61 }
 0x377   : > { %639 = vmatpush1.msra.mxu1 %v612_v3 }
 0x378   : > { %817 = vmatmul.mubr.msk.f32.vlgmr.msra.gmra.mrb[0].mxu1 %vm456_vm8, %v269_v4 }
 0x379   : > { %v617_v5 = vpop.permute.xlu0 %616 }
 0x44b   : > { %v688_v6 = vpop.f32.mrb[0].mxu1 }
 0x44c   : > { %v689_v62 = vadd.f32 %v688_v6, %v617_v5  ;;  %v690_v63 = vpop.f32.mrb[1].mxu1 }
 0x44d   : > { %v691_v7 = vadd.f32 %v690_v63, %v617_v5 }
 0x44f   : > { %v693_v2 = vadd.f32 %v691_v7, %v689_v62 }
 0x451   : > { %694 = vadd.xlane.f32.xlu1 %v693_v2 }
 0x4de   : > { %v695_v21 = vpop.xlane.xlu1 %694 }
 0x4df   : > { %v696_v10 = vmul.f32 0.00390625, %v695_v21 }
 0x4e1   : > { %v697_v11 = vsub.f32 %v689_v62, %v696_v10  ;;  %v698_v26 = vsub.f32 %v691_v7, %v696_v10 }
 0x4e3   : > { %v699_v12 = vmul.f32 %v697_v11, %v697_v11  ;;  %v700_v13 = vmul.f32 %v698_v26, %v698_v26 }
 0x4e5   : > { %v701_v18 = vadd.f32 %v700_v13, %v699_v12 }
 0x4e7   : > { %702 = vadd.xlane.f32.xlu0 %v701_v18 }
 0x574   : > { %v703_v19 = vpop.xlane.xlu0 %702 }
 0x575   : > { %v704_v20 = vmul.f32 0.00390625, %v703_v19 }
 0x577   : > { %v705_v22 = vadd.f32 1e-05, %v704_v20 }
 0x579   : > { %916 = vrsqrt.f32 %v705_v22 }
 0x583   : > { %v917_v23 = vpop.eup %916 }
 0x584   : > { %v707_v24 = vmul.f32 %v917_v23, %v697_v11  ;;  %v708_v25 = vmul.f32 %v917_v23, %v698_v26 }
 0x586   : > { %v709_v27 = vadd.f32 %v707_v24, %v1178_v0  ;;  %v710_v28 = vadd.f32 %v708_v25, %v1184_v1 }
 0x588   : > { %v711_v29 = vmax.f32 %v709_v27, 0.0  ;;  %v712_v30 = vmax.f32 %v710_v28, 0.0 }
 0x58a   : > { %713 = vst [vmem:[%s267_s13] sm:$0xff] %v711_v29  ;;  %714 = vst [vmem:[%s267_s13 + $0x8] sm:$0xff] %v712_v30 }
 0x58b   : > { %961 = shalt.err (!%p958_p4)
}
 0x58c   : > { %s962_s26 = scalar_lea.hbm %s1447_s29, 256  ;;  %s966_s20 = scalar_lea.hbm %s1497_s6, 512 }
 0x58d   : > { %p963_p5 = scmp.ne.s32.totalorder %s1447_s29, %s962_s26  ;;  %p967_p0 = scmp.lt.u32.totalorder %s1447_s29, %s1497_s6 }
 0x58e   : > { %p968_p1 = scmp.lt.u32.totalorder %s966_s20, %s962_s26  ;;  %p970_p6 = scmp.lt.u32.totalorder %s962_s26, %s1447_s29 }
 0x58f   : > { %p964_p8 = pnand %p963_p5, %p1508_p11 }
 0x590   : > { %p969_p3 = por %p968_p1, %p967_p0 }
 0x591   : > { %p965_p9 = pneg %p964_p8 }
 0x592   : > { %p971_p12 = por %p970_p6, %p969_p3 }
 0x594   : > { %p972_p13 = pnand %p971_p12, %p965_p9 }
 0x596   : > { %975 = shalt.err (!%p972_p13)
}
 0x597   : > { %859 = dma.vmem_to_hbm [thread:$0]  (%p1508_p11), %s1449_s11, 256, %s1447_s29, %s716_s25  }
 0x598 PF: > { %s742_s13 = sand.u32 1, %s1002_s21   ;;  %p1509_p7 = scmp.ne.s32.totalorder %s1503_s10, 0 }
 0x599   : > { %p1510_p10 = scmp.ge.s32.totalorder %s1014_s24, 2  ;;  %s743_s15 = scalar_lea.sflag [#allocation4], %s742_s13 }
 0x59b   : > { %p866_p2 = pnand %p1510_p10, %p1509_p7 }
 0x59d   : > { %997 = dma.done.wait (!%p866_p2), %s743_s15, 256  }
 0x59e   : > { %999 = vsyncadd (!%p866_p2), %s743_s15, 4294967040  ;;  %p19_p4 = scmp.ge.s32.totalorder %s1088_s27, 4   ;;  %s1511_s21 = smov %s1006_s22 }
 0x59f   : > { %s1512_s22 = smov %s1010_s23  ;;  %s1513_s23 = smov %s1100_s30 }
 0x5a0   : > { %s1514_s24 = smov %s1088_s27  ;;  %21 = sbr.rel (!%p19_p4) target bundleno = 5 (0x5), region = 96 }
 0x5a7   :  { %748 = vsyncpa [#allocation3], 1 }
 0x5a8   :  { %750 = vsyncpa [#allocation3 + $0x1], 1 }
 0x5a9   :  { %751 = vsyncpa [#allocation4], 1 }
 0x5aa   :  { %753 = vsyncpa [#allocation4 + $0x1], 1 }

</bundles_post_ra>
